<compile_context>
chip_gen: v7x
topology: tpu7x:2x2x1
jax: 0.10.0
libtpu: 0.0.40
codegen_flags: <defaults>
</compile_context>

<pallas_src>
import functools

import jax
import jax.numpy as jnp
from jax.experimental import pallas as pl
from jax.experimental.pallas import tpu as pltpu

_LANE = 128            # vreg lane width
_SUBLANE = 8           # vreg sublane width
_VMEM_BUDGET = 40 << 20     # target for the double-buffered working set
_VMEM_HEADROOM = 16 << 20   # slack on top of the estimate (layout padding etc.)
_MIN_SPLIT_BATCH = 2048     # v7x: keep >=2 / even batch tiles above this size


def _round_up(n: int, m: int) -> int:
    return ((n + m - 1) // m) * m


def _cdiv(a: int, b: int) -> int:
    return -(-a // b)


def _lane_divisors(n: int):
    """Divisors of n that are multiples of 128, descending (n % 128 == 0)."""
    m = n // _LANE
    return sorted((_LANE * d for d in range(1, m + 1) if m % d == 0), reverse=True)


def _vmem_bytes(tb, th, to, in_dim, x_isz, p_isz, o_isz):
    """Rough VMEM working set: double-buffered blocks + f32 accumulator."""
    return (2 * tb * in_dim * x_isz        # x block
            + 2 * in_dim * th * p_isz      # w1 block
            + 2 * th * 4                   # b1 block (f32)
            + 2 * th * to * p_isz          # w2 block
            + 2 * to * 4                   # b2 block (f32)
            + 2 * tb * to * o_isz          # out block
            + tb * to * 4)                 # f32 accumulator scratch


def _choose_blocks(B, in_dim, h_p, out_p, *, x_itemsize, param_itemsize,
                   out_itemsize, block_b, block_h, block_out):
    """Pick (batch_tile, hidden_tile, out_tile) so everything fits VMEM."""
    # ---- batch tile --------------------------------------------------------
    block_b = max(_SUBLANE, (block_b // _SUBLANE) * _SUBLANE)
    if B <= block_b:
        tb = B                                    # exact single tile (block == full dim)
        if B >= _MIN_SPLIT_BATCH:                 # v7x: feed both TensorCores
            tb = _round_up(_cdiv(B, 2), _SUBLANE)
    else:
        tb = block_b
        n_tiles = _cdiv(B, tb)
        if n_tiles % 2 == 1 and B >= _MIN_SPLIT_BATCH:
            tb = _round_up(_cdiv(B, n_tiles + 1), _SUBLANE)   # even count for v7x

    # ---- feature tiles (multiples of 128 that divide the padded dims) ------
    h_cands = _lane_divisors(h_p)
    o_cands = _lane_divisors(out_p)

    def legalize(requested, cands):
        if requested is None:
            return cands[0]
        fitting = [c for c in cands if c <= requested]
        return fitting[0] if fitting else cands[-1]

    th = legalize(block_h, h_cands)
    to = legalize(block_out, o_cands)

    def est(tb_, th_, to_):
        return _vmem_bytes(tb_, th_, to_, in_dim,
                           x_itemsize, param_itemsize, out_itemsize)

    def shrink(cur, cands):
        smaller = [c for c in cands if c < cur]
        return smaller[0] if smaller else cur

    # Shrink until the double-buffered working set fits the VMEM budget.
    while est(tb, th, to) > _VMEM_BUDGET:
        if th > _LANE and th >= to:
            th = shrink(th, h_cands)
        elif to > _LANE:
            to = shrink(to, o_cands)
        elif th > _LANE:
            th = shrink(th, h_cands)
        elif tb > _SUBLANE:
            tb = max(_SUBLANE, _round_up(tb // 2, _SUBLANE))
        else:
            break   # minimal tiling; let the compiler report if it cannot fit
    return tb, th, to


def _mlp_kernel(x_ref, w1_ref, b1_ref, w2_ref, b2_ref, o_ref, acc_ref):
    """One (batch tile, out-feature tile, hidden tile) step of the fused MLP."""
    k = pl.program_id(2)           # hidden-block (reduction) axis, innermost

    @pl.when(k == 0)
    def _init():
        acc_ref[...] = jnp.zeros_like(acc_ref)

    # fc1 partial: this batch tile x one block of hidden columns.
    # Cast x to the param dtype on the VPU (free filler next to the MXU).
    x = x_ref[...].astype(w1_ref.dtype)
    h = jnp.dot(x, w1_ref[...], preferred_element_type=jnp.float32)
    h = jnp.maximum(h + b1_ref[...], 0.0)          # bias + ReLU in f32

    # fc2 partial: contract this hidden block into the f32 accumulator.
    acc_ref[...] += jnp.dot(h.astype(w2_ref.dtype), w2_ref[...],
                            preferred_element_type=jnp.float32)

    @pl.when(k == pl.num_programs(2) - 1)
    def _finalize():
        o_ref[...] = (acc_ref[...] + b2_ref[...]).astype(o_ref.dtype)


@functools.partial(
    jax.jit,
    static_argnames=("out_features", "block_b", "block_h", "block_out"))
def _mlp_forward(x, w1p, b1p, w2p, b2p, *, out_features,
                 block_b=1024, block_h=None, block_out=None):
    """Fused MLP forward on prepared (padded, cast) parameters.

    x  : [B, In]  (any float dtype; output is returned in the same dtype)
    w1p: [In, H_p], b1p: [1, H_p], w2p: [H_p, Out_p], b2p: [1, Out_p]
    """
    B, in_dim = x.shape
    h_p = w1p.shape[1]
    out_p = w2p.shape[1]

    tb, th, to = _choose_blocks(
        B, in_dim, h_p, out_p,
        x_itemsize=x.dtype.itemsize,
        param_itemsize=w1p.dtype.itemsize,
        out_itemsize=x.dtype.itemsize,
        block_b=block_b, block_h=block_h, block_out=block_out)

    grid = (_cdiv(B, tb), out_p // to, h_p // th)

    est = _vmem_bytes(tb, th, to, in_dim,
                      x.dtype.itemsize, w1p.dtype.itemsize, x.dtype.itemsize)

    flops = 2 * B * in_dim * h_p + 2 * B * h_p * out_p
    bytes_accessed = (x.size * x.dtype.itemsize
                      + w1p.size * w1p.dtype.itemsize
                      + w2p.size * w2p.dtype.itemsize
                      + b1p.size * 4 + b2p.size * 4
                      + B * out_p * x.dtype.itemsize)

    out = pl.pallas_call(
        _mlp_kernel,
        out_shape=jax.ShapeDtypeStruct((B, out_p), x.dtype),
        grid=grid,
        in_specs=[
            pl.BlockSpec((tb, in_dim), lambda i, j, k: (i, 0)),   # x: batch-tiled
            pl.BlockSpec((in_dim, th), lambda i, j, k: (0, k)),   # w1: hidden-tiled
            pl.BlockSpec((1, th), lambda i, j, k: (0, k)),        # b1
            pl.BlockSpec((th, to), lambda i, j, k: (k, j)),       # w2: H x Out tiled
            pl.BlockSpec((1, to), lambda i, j, k: (0, j)),        # b2
        ],
        out_specs=pl.BlockSpec((tb, to), lambda i, j, k: (i, j)),
        scratch_shapes=[pltpu.VMEM((tb, to), jnp.float32)],       # fc2 accumulator
        compiler_params=pltpu.CompilerParams(
            dimension_semantics=("parallel", "parallel", "arbitrary"),
            vmem_limit_bytes=int(min(64 << 20, est + _VMEM_HEADROOM)),
        ),
        cost_estimate=pl.CostEstimate(
            flops=flops, transcendentals=0, bytes_accessed=bytes_accessed),
    )(x, w1p, b1p, w2p, b2p)

    if out_p != out_features:
        out = out[:, :out_features]     # lane-padding strip only (no dtype convert)
    return out


class BasicMLP:
    """Pallas-TPU port of the PyTorch BasicMLP (fc1 -> ReLU -> fc2).

    Weights are padded/cast exactly once at construction (hoisted out of the
    per-call path). `w1`/`w2` are expected in x @ W layout, i.e. [in, out] --
    the transpose of torch.nn.Linear's stored [out, in] weight.
    Use param_dtype=jnp.float32 if full f32 matmul fidelity is required.
    """

    def __init__(self, w1, b1, w2, b2, *, param_dtype=jnp.bfloat16):
        in_dim, hidden = w1.shape
        hidden2, out_dim = w2.shape
        assert hidden == hidden2 and b1.shape == (hidden,) and b2.shape == (out_dim,)

        h_p = _round_up(hidden, _LANE)
        out_p = _round_up(out_dim, _LANE)
        # Zero padding is numerically inert: padded hidden units have zero
        # weight and zero bias (ReLU(0) = 0), padded output columns are zero
        # and get sliced off after the kernel.
        self.w1p = jnp.zeros((in_dim, h_p), param_dtype).at[:, :hidden].set(
            w1.astype(param_dtype))
        self.b1p = jnp.zeros((1, h_p), jnp.float32).at[0, :hidden].set(
            b1.astype(jnp.float32))
        self.w2p = jnp.zeros((h_p, out_p), param_dtype).at[:hidden, :out_dim].set(
            w2.astype(param_dtype))
        self.b2p = jnp.zeros((1, out_p), jnp.float32).at[0, :out_dim].set(
            b2.astype(jnp.float32))
        self.out_features = out_dim

    def __call__(self, x, *, block_b=1024, block_h=None, block_out=None):
        return _mlp_forward(x, self.w1p, self.b1p, self.w2p, self.b2p,
                            out_features=self.out_features,
                            block_b=block_b, block_h=block_h,
                            block_out=block_out)


def _reference(x, w1, b1, w2, b2):
    return jnp.maximum(x @ w1 + b1, 0.0) @ w2 + b2


if __name__ == "__main__":
    key = jax.random.PRNGKey(0)

    # Small shapes consistent with BasicMLP(input_size, hidden_size, output_size).
    batch, input_size, hidden_size, output_size = 8, 32, 64, 16
    kx, kw1, kb1, kw2, kb2, kx2, kx3 = jax.random.split(key, 7)

    x = jax.random.normal(kx, (batch, input_size), dtype=jnp.float32)
    w1 = jax.random.normal(kw1, (input_size, hidden_size), dtype=jnp.float32) * 0.1
    b1 = jax.random.normal(kb1, (hidden_size,), dtype=jnp.float32) * 0.1
    w2 = jax.random.normal(kw2, (hidden_size, output_size), dtype=jnp.float32) * 0.1
    b2 = jax.random.normal(kb2, (output_size,), dtype=jnp.float32) * 0.1

    mlp = BasicMLP(w1, b1, w2, b2)          # params padded/cast once, reused below

    # 1) Basic check at the module's natural small shapes.
    out = mlp(x)
    jax.block_until_ready(out)
    ref = _reference(x, w1, b1, w2, b2)
    assert out.shape == (batch, output_size)
    assert out.dtype == x.dtype
    # bf16 matmul operands with f32 accumulation -> loosened tolerance.
    assert jnp.allclose(out, ref, atol=2e-2, rtol=2e-2), (
        float(jnp.max(jnp.abs(out - ref))))

    # 2) Batch not a multiple of 8 -> exact full-dim batch tile, no padding pass.
    x2 = jax.random.normal(kx2, (300, input_size), dtype=jnp.float32)
    out2 = mlp(x2)
    jax.block_until_ready(out2)
    ref2 = _reference(x2, w1, b1, w2, b2)
    assert out2.shape == (300, output_size)
    assert jnp.allclose(out2, ref2, atol=2e-2, rtol=2e-2), (
        float(jnp.max(jnp.abs(out2 - ref2))))

    # 3) Multi-tile batch grid (B > block_b) -> pipelined batch axis + partial tile.
    out2b = mlp(x2, block_b=128)
    jax.block_until_ready(out2b)
    assert jnp.allclose(out2b, ref2, atol=2e-2, rtol=2e-2), (
        float(jnp.max(jnp.abs(out2b - ref2))))

    # 4) Feature-tiled fallback path: hidden/out blocks smaller than the padded
    #    dims -> grid over Out and H with the f32 VMEM accumulator.
    hidden2_size, output2_size = 320, 272           # both pad to 384
    kw1b, kb1b, kw2b, kb2b = jax.random.split(jax.random.fold_in(key, 1), 4)
    w1b = jax.random.normal(kw1b, (input_size, hidden2_size), jnp.float32) * 0.1
    b1b = jax.random.normal(kb1b, (hidden2_size,), jnp.float32) * 0.1
    w2b = jax.random.normal(kw2b, (hidden2_size, output2_size), jnp.float32) * 0.1
    b2b = jax.random.normal(kb2b, (output2_size,), jnp.float32) * 0.1
    mlp2 = BasicMLP(w1b, b1b, w2b, b2b)
    x3 = jax.random.normal(kx3, (24, input_size), dtype=jnp.float32)
    out3 = mlp2(x3, block_h=128, block_out=128)     # grid = (1, 3, 3)
    jax.block_until_ready(out3)
    ref3 = _reference(x3, w1b, b1b, w2b, b2b)
    assert out3.shape == (24, output2_size)
    assert jnp.allclose(out3, ref3, atol=2e-2, rtol=2e-2), (
        float(jnp.max(jnp.abs(out3 - ref3))))

    print("KERNEL_OK")
</pallas_src>

<mosaic_0001>
module attributes {stable_mosaic.version = 11 : i64} {
  func.func @_mlp_kernel(%arg0: i32, %arg1: i32, %arg2: i32, %arg3: memref<8x32xf32, #tpu.memory_space<vmem>>, %arg4: memref<32x128xbf16, #tpu.memory_space<vmem>>, %arg5: memref<1x128xf32, #tpu.memory_space<vmem>>, %arg6: memref<128x128xbf16, #tpu.memory_space<vmem>>, %arg7: memref<1x128xf32, #tpu.memory_space<vmem>>, %arg8: memref<8x128xf32, #tpu.memory_space<vmem>>, %arg9: memref<8x128xf32, #tpu.memory_space<vmem>>) attributes {dimension_semantics = [#tpu.dimension_semantics<parallel>, #tpu.dimension_semantics<parallel>, #tpu.dimension_semantics<arbitrary>], iteration_bounds = array<i64: 1, 1, 1>, scalar_prefetch = 0 : i64, scratch_operands = 1 : i64, tpu.core_type = #tpu.core_type<tc>, window_params = [{transform_indices = @transform_0, window_bounds = array<i64: 8, 32>}, {transform_indices = @transform_1, window_bounds = array<i64: 32, 128>}, {transform_indices = @transform_2, window_bounds = array<i64: 1, 128>}, {transform_indices = @transform_3, window_bounds = array<i64: 128, 128>}, {transform_indices = @transform_4, window_bounds = array<i64: 1, 128>}, {transform_indices = @transform_5, window_bounds = array<i64: 8, 128>}]} {
    %c0_i32 = arith.constant 0 : i32
    %0 = arith.cmpi eq, %arg2, %c0_i32 : i32
    %1 = arith.extui %0 : i1 to i32
    %c0_i32_0 = arith.constant 0 : i32
    %2 = arith.cmpi ne, %1, %c0_i32_0 : i32
    scf.if %2 {
      %cst_16 = arith.constant 0.000000e+00 : f32
      %21 = vector.broadcast %cst_16 : f32 to vector<8x128xf32>
      %c0_17 = arith.constant 0 : index
      %c0_18 = arith.constant 0 : index
      %22 = vector.load %arg9[%c0_17, %c0_18] : memref<8x128xf32, #tpu.memory_space<vmem>>, vector<8x128xf32>
      tpu.vector_store %arg9[%c0_17, %c0_18], %21 {strides = array<i32>} : memref<8x128xf32, #tpu.memory_space<vmem>>, vector<8x128xf32>,
    } else {
    }
    %c0 = arith.constant 0 : index
    %c0_1 = arith.constant 0 : index
    %3 = vector.load %arg3[%c0, %c0_1] : memref<8x32xf32, #tpu.memory_space<vmem>>, vector<8x32xf32>
    %4 = arith.truncf %3 : vector<8x32xf32> to vector<8x32xbf16>
    %c0_2 = arith.constant 0 : index
    %c0_3 = arith.constant 0 : index
    %5 = vector.load %arg4[%c0_2, %c0_3] : memref<32x128xbf16, #tpu.memory_space<vmem>>, vector<32x128xbf16>
    %cst = arith.constant dense<0.000000e+00> : vector<8x128xf32>
    %6 = tpu.matmul %4, %5, %cst {dimension_numbers = #tpu.dot_dimension_numbers<[1], [0], [0], [1], [0, 0, 1, 1], [], []>} : vector<8x32xbf16>, vector<32x128xbf16>, vector<8x128xf32> -> vector<8x128xf32>
    %c0_4 = arith.constant 0 : index
    %c0_5 = arith.constant 0 : index
    %7 = vector.load %arg5[%c0_4, %c0_5] : memref<1x128xf32, #tpu.memory_space<vmem>>, vector<1x128xf32>
    %8 = vector.broadcast %7 : vector<1x128xf32> to vector<8x128xf32>
    %9 = arith.addf %6, %8 : vector<8x128xf32>
    %cst_6 = arith.constant 0.000000e+00 : f32
    %10 = vector.broadcast %cst_6 : f32 to vector<8x128xf32>
    %11 = arith.maximumf %9, %10 : vector<8x128xf32>
    %c0_7 = arith.constant 0 : index
    %c0_8 = arith.constant 0 : index
    %12 = vector.load %arg9[%c0_7, %c0_8] : memref<8x128xf32, #tpu.memory_space<vmem>>, vector<8x128xf32>
    %13 = arith.truncf %11 : vector<8x128xf32> to vector<8x128xbf16>
    %c0_9 = arith.constant 0 : index
    %c0_10 = arith.constant 0 : index
    %14 = vector.load %arg6[%c0_9, %c0_10] : memref<128x128xbf16, #tpu.memory_space<vmem>>, vector<128x128xbf16>
    %cst_11 = arith.constant dense<0.000000e+00> : vector<8x128xf32>
    %15 = tpu.matmul %13, %14, %cst_11 {dimension_numbers = #tpu.dot_dimension_numbers<[1], [0], [0], [1], [0, 0, 1, 1], [], []>} : vector<8x128xbf16>, vector<128x128xbf16>, vector<8x128xf32> -> vector<8x128xf32>
    %16 = arith.addf %12, %15 : vector<8x128xf32>
    %c0_12 = arith.constant 0 : index
    %c0_13 = arith.constant 0 : index
    %17 = vector.load %arg9[%c0_12, %c0_13] : memref<8x128xf32, #tpu.memory_space<vmem>>, vector<8x128xf32>
    tpu.vector_store %arg9[%c0_12, %c0_13], %16 {strides = array<i32>} : memref<8x128xf32, #tpu.memory_space<vmem>>, vector<8x128xf32>,
    %c0_i32_14 = arith.constant 0 : i32
    %18 = arith.cmpi eq, %arg2, %c0_i32_14 : i32
    %19 = arith.extui %18 : i1 to i32
    %c0_i32_15 = arith.constant 0 : i32
    %20 = arith.cmpi ne, %19, %c0_i32_15 : i32
    scf.if %20 {
      %c0_16 = arith.constant 0 : index
      %c0_17 = arith.constant 0 : index
      %21 = vector.load %arg9[%c0_16, %c0_17] : memref<8x128xf32, #tpu.memory_space<vmem>>, vector<8x128xf32>
      %c0_18 = arith.constant 0 : index
      %c0_19 = arith.constant 0 : index
      %22 = vector.load %arg7[%c0_18, %c0_19] : memref<1x128xf32, #tpu.memory_space<vmem>>, vector<1x128xf32>
      %23 = vector.broadcast %22 : vector<1x128xf32> to vector<8x128xf32>
      %24 = arith.addf %21, %23 : vector<8x128xf32>
      %c0_20 = arith.constant 0 : index
      %c0_21 = arith.constant 0 : index
      %25 = vector.load %arg8[%c0_20, %c0_21] : memref<8x128xf32, #tpu.memory_space<vmem>>, vector<8x128xf32>
      tpu.vector_store %arg8[%c0_20, %c0_21], %24 {strides = array<i32>} : memref<8x128xf32, #tpu.memory_space<vmem>>, vector<8x128xf32>,
    } else {
    }
    return
  }
  func.func @transform_0(%arg0: i32, %arg1: i32, %arg2: i32) -> (i32, i32) {
    %c0_i32 = arith.constant 0 : i32
    %c0_i32_0 = arith.constant 0 : i32
    return %arg0, %c0_i32 : i32, i32
  }
  func.func @transform_1(%arg0: i32, %arg1: i32, %arg2: i32) -> (i32, i32) {
    %c0_i32 = arith.constant 0 : i32
    %c0_i32_0 = arith.constant 0 : i32
    return %c0_i32, %arg2 : i32, i32
  }
  func.func @transform_2(%arg0: i32, %arg1: i32, %arg2: i32) -> (i32, i32) {
    %c0_i32 = arith.constant 0 : i32
    %c0_i32_0 = arith.constant 0 : i32
    return %c0_i32, %arg2 : i32, i32
  }
  func.func @transform_3(%arg0: i32, %arg1: i32, %arg2: i32) -> (i32, i32) {
    %c0_i32 = arith.constant 0 : i32
    return %arg2, %arg1 : i32, i32
  }
  func.func @transform_4(%arg0: i32, %arg1: i32, %arg2: i32) -> (i32, i32) {
    %c0_i32 = arith.constant 0 : i32
    %c0_i32_0 = arith.constant 0 : i32
    return %c0_i32, %arg1 : i32, i32
  }
  func.func @transform_5(%arg0: i32, %arg1: i32, %arg2: i32) -> (i32, i32) {
    %c0_i32 = arith.constant 0 : i32
    return %arg0, %arg1 : i32, i32
  }
}

</mosaic_0001>

<bundles_post_ra>
// kernel: _mlp_forward.1
= control target key start
LH: loop header
LB: loop body
LE: loop exit
PB: predicated region body
PF: predicated region fallthrough
CT: control target
= control target key end

     0   :  { %10 = vsyncpa [#allocation4], 0  ;;  %s536_s0 = inlined_call_operand.hbm [shape: f32[8,32], index: 0, kind: input, shape index: {}]   ;;  %s537_s1 = inlined_call_operand.hbm [shape: bf16[32,128], index: 1, kind: input, shape index: {}]   ;;  %s538_s2 = inlined_call_operand.vmem [shape: f32[1,128], index: 2, kind: input, shape index: {}]   ;;  %s539_s3 = inlined_call_operand.hbm [shape: bf16[128,128], index: 3, kind: input, shape index: {}]   ;;  %s540_s4 = inlined_call_operand.vmem [shape: f32[1,128], index: 4, kind: input, shape index: {}]   ;;  %s541_s5 = inlined_call_operand.hbm [shape: f32[8,128], index: 5, kind: output, shape index: {}]  }
   0x1   :  { %11 = vsyncpa [#allocation7], 0 }
   0x2   :  { %12 = vsyncpa [#allocation5], 0  ;;  %s438_s18 = smov [#allocation6]   ;;  %s344_s22 = scalar_lea.hbm %s537_s1, 256 }
   0x3   :  { %s28_s19 = sshll.u32 %s438_s18, 4  ;;  %p345_p0 = scmp.ne.s32.totalorder %s537_s1, %s344_s22  ;;  %s29_s19 = int_to_ptr.vmem [resolvable:$true] %s28_s19 }
   0x4   :  { %p348_p1 = scmp.lt.u32.totalorder %s344_s22, %s537_s1 }
   0x6   :  { %p350_p2 = pnand %p348_p1, %p345_p0 }
   0x8   :  { %353 = shalt.err (!%p350_p2)
}
   0x9   :  { %s354_s27 = scalar_lea.vmem %s29_s19, 256  ;;  %p359_p4 = scmp.lt.s32.totalorder %s29_s19, %s29_s19 }
   0xa   :  { %p355_p3 = scmp.ne.s32.totalorder %s29_s19, %s354_s27  ;;  %p360_p5 = scmp.lt.s32.totalorder %s354_s27, %s354_s27 }
   0xc   :  { %p361_p6 = por %p360_p5, %p359_p4 }
   0xe   :  { %p362_p7 = pnand %p361_p6, %p355_p3 }
  0x10   :  { %365 = shalt.err (!%p362_p7)
}
  0x11   :  { %s439_s28 = smov 64   ;;  %s440_s29 = smov 4  }
  0x12   :  { %34 = dma.hbm_to_vmem [thread:$0]  %s537_s1, 256, %s29_s19, [#allocation7], %s439_s28, %s439_s28, %s440_s29  }
  0x13   :  { %s441_s7 = smov [#allocation3]   ;;  %s442_s9 = smov [#allocation8]  }
  0x14   :  { %s19_s8 = sshll.u32 %s441_s7, 4  ;;  %s42_s10 = sshll.u32 %s442_s9, 4  ;;  %s20_s8 = int_to_ptr.vmem [resolvable:$true] %s19_s8  ;;  %s43_s10 = int_to_ptr.vmem [resolvable:$true] %s42_s10 }
  0x15   :  { %s366_s13 = scalar_lea.hbm %s536_s0, 128 }
  0x16   :  { %p367_p8 = scmp.ne.s32.totalorder %s536_s0, %s366_s13  ;;  %p370_p9 = scmp.lt.u32.totalorder %s366_s13, %s536_s0 }
  0x18   :  { %p372_p10 = pnand %p370_p9, %p367_p8 }
  0x1a   :  { %375 = shalt.err (!%p372_p10)
}
  0x1b   :  { %s376_s1 = scalar_lea.vmem %s20_s8, 128  ;;  %p381_p12 = scmp.lt.s32.totalorder %s20_s8, %s20_s8 }
  0x1c   :  { %p377_p11 = scmp.ne.s32.totalorder %s20_s8, %s376_s1  ;;  %p382_p13 = scmp.lt.s32.totalorder %s376_s1, %s376_s1 }
  0x1e   :  { %p383_p0 = por %p382_p13, %p381_p12 }
  0x20   :  { %p384_p1 = pnand %p383_p0, %p377_p11 }
  0x22   :  { %387 = shalt.err (!%p384_p1)
}
  0x23   :  { %22 = dma.hbm_to_vmem [thread:$0]  %s536_s0, 128, %s20_s8, [#allocation4]  }
  0x24   :  { %s388_s22 = scalar_lea.hbm %s539_s3, 1024 }
  0x25   :  { %p389_p2 = scmp.ne.s32.totalorder %s539_s3, %s388_s22  ;;  %p392_p3 = scmp.lt.u32.totalorder %s388_s22, %s539_s3 }
  0x27   :  { %p394_p4 = pnand %p392_p3, %p389_p2 }
  0x29   :  { %397 = shalt.err (!%p394_p4)
}
  0x2a   :  { %s398_s27 = scalar_lea.vmem %s43_s10, 1024  ;;  %p403_p6 = scmp.lt.s32.totalorder %s43_s10, %s43_s10 }
  0x2b   :  { %p399_p5 = scmp.ne.s32.totalorder %s43_s10, %s398_s27  ;;  %p404_p7 = scmp.lt.s32.totalorder %s398_s27, %s398_s27 }
  0x2d   :  { %p405_p8 = por %p404_p7, %p403_p6 }
  0x2f   :  { %p406_p9 = pnand %p405_p8, %p399_p5 }
  0x31   :  { %409 = shalt.err (!%p406_p9)
}
  0x32   :  { %48 = dma.hbm_to_vmem [thread:$0]  %s539_s3, 1024, %s43_s10, [#allocation7], %s439_s28, %s439_s28, %s440_s29  }
  0x33   :  { %432 = dma.done.wait [#allocation4], 128  }
  0x34   :  { %433 = vsyncadd [#allocation4], 4294967168 }
  0x35   :  { %434 = dma.done.wait [#allocation7], 1280  }
  0x36   :  { %435 = vsyncadd [#allocation7], 4294966016  ;;  %v443_v0 = vmov 0.0   ;;  %vm444_vm0 = vmmov 0   ;;  %v334_v1 = vld [vmem:[#allocation6] sm:$0xff]   ;;  %v335_v2 = vld [vmem:[#allocation6 + $0x8] sm:$0xff]  }
  0x37   :  { %298 = vmatprep.subr.bf16.mxu0 %v443_v0  ;;  %302 = vmatprep.mubr.msk.bf16.mxu0 %vm444_vm0, %v443_v0  ;;  %v66_v3 = vld [vmem:[#allocation3] sm:$0xff]  ;;  %v336_v4 = vld [vmem:[#allocation8] sm:$0xff]   ;;  %vm91_vm1 = vcmask 261120   ;;  %v338_v7 = vld [vmem:[#allocation8 + $0x10] sm:$0xff]   ;;  %s445_s7 = smov [#allocation9]  }
  0x38   :  { %306 = vmatprep.subr.bf16.mxu1 %v443_v0  ;;  %322 = vmatprep.mubr.msk.bf16.mxu1 %vm444_vm0, %v443_v0  ;;  %v67_v5 = vpack.c.bf16 %v66_v3, %v66_v3  ;;  %v337_v6 = vld [vmem:[#allocation8 + $0x8] sm:$0xff]   ;;  %v339_v8 = vld [vmem:[#allocation8 + $0x18] sm:$0xff]   ;;  %v340_v9 = vld [vmem:[#allocation8 + $0x20] sm:$0xff]   ;;  %s263_s8 = sshll.u32 %s445_s7, 4  ;;  %s264_s8 = int_to_ptr.vmem [resolvable:$true] %s263_s8 }
  0x39   :  { %299 = vmatpush3.bf16.msra.mxu0 %v334_v1  ;;  %307 = vmatpush3.bf16.msra.mxu1 %v336_v4  ;;  %v341_v10 = vld [vmem:[#allocation8 + $0x28] sm:$0xff]   ;;  %v342_v11 = vld [vmem:[#allocation8 + $0x30] sm:$0xff]   ;;  %v343_v12 = vld [vmem:[#allocation8 + $0x38] sm:$0xff]   ;;  %p415_p11 = scmp.lt.s32.totalorder %s264_s8, %s264_s8 }
  0x3a   :  { %300 = vmatprep.subr.bf16.mxu0 %v443_v0  ;;  %308 = vmatprep.subr.bf16.mxu1 %v443_v0  ;;  %v273_v13 = vld [vmem:[%s538_s2] ss:$0 sm:$0xff]  ;;  %s410_s2 = scalar_lea.vmem %s264_s8, 128 }
  0x3b   :  { %v285_v21 = vld [vmem:[%s540_s4] ss:$0 sm:$0xff]  ;;  %p411_p10 = scmp.ne.s32.totalorder %s264_s8, %s410_s2  ;;  %p416_p12 = scmp.lt.s32.totalorder %s410_s2, %s410_s2 }
  0x3d   :  { %301 = vmatpush3.bf16.msra.mxu0 %v335_v2  ;;  %309 = vmatpush3.bf16.msra.mxu1 %v337_v6  ;;  %p417_p13 = por %p416_p12, %p415_p11 }
  0x3e   :  { %310 = vmatprep.subr.bf16.mxu1 %v443_v0 }
  0x3f   :  { %p418_p0 = pnand %p417_p13, %p411_p10 }
  0x40   :  { %303 = vmatmul.mubr.msk.bf16.vlgmr.msra.gmra.mrb[0].mxu0 %vm91_vm1, %v67_v5 }
  0x41   :  { %311 = vmatpush3.bf16.msra.mxu1 %v338_v7 }
  0x42   :  { %312 = vmatprep.subr.bf16.mxu1 %v443_v0 }
  0x45   :  { %313 = vmatpush3.bf16.msra.mxu1 %v339_v8 }
  0x46   :  { %314 = vmatprep.subr.bf16.mxu1 %v443_v0 }
  0x49   :  { %315 = vmatpush3.bf16.msra.mxu1 %v340_v9 }
  0x4a   :  { %316 = vmatprep.subr.bf16.mxu1 %v443_v0 }
  0x4d   :  { %317 = vmatpush3.bf16.msra.mxu1 %v341_v10 }
  0x4e   :  { %318 = vmatprep.subr.bf16.mxu1 %v443_v0 }
  0x51   :  { %319 = vmatpush3.bf16.msra.mxu1 %v342_v11 }
  0x52   :  { %320 = vmatprep.subr.bf16.mxu1 %v443_v0 }
  0x55   :  { %321 = vmatpush3.bf16.msra.mxu1 %v343_v12 }
 0x113   :  { %v129_v14 = vpop.f32.mrb[0].mxu0 }
 0x114   :  { %v130_v15 = vadd.f32 %v273_v13, %v129_v14  ;;  %v304_v16 = vpop.f32.mrb[1].mxu0 }
 0x115   :  { %v132_v17 = vpop.f32.mrb[2].mxu0 }
 0x116   :  { %v135_v18 = vmax.f32 %v130_v15, 0.0  ;;  %v305_v19 = vpop.f32.mrb[3].mxu0 }
 0x118   :  { %v137_v20 = vpack.c.bf16 %v135_v18, %v135_v18 }
 0x11a   :  { %323 = vmatmul.mubr.bf16.vlgmr.msra.gmra.mrb[0].mxu1 %v137_v20 }
 0x1ed   :  { %v236_v22 = vpop.f32.mrb[0].mxu1 }
 0x1ee   :  { %v255_v23 = vadd.f32 %v285_v21, %v236_v22  ;;  %v324_v24 = vpop.f32.mrb[1].mxu1 }
 0x1ef   :  { %v239_v25 = vpop.f32.mrb[2].mxu1 }
 0x1f0   :  { %256 = vst [vmem:[#allocation9] sm:$0xff] %v255_v23  ;;  %v325_v26 = vpop.f32.mrb[3].mxu1 }
 0x1f1   :  { %421 = shalt.err (!%p418_p0)
}
 0x1f2   :  { %s422_s4 = scalar_lea.hbm %s541_s5, 128 }
 0x1f3   :  { %p423_p1 = scmp.ne.s32.totalorder %s541_s5, %s422_s4  ;;  %p426_p2 = scmp.lt.u32.totalorder %s422_s4, %s541_s5 }
 0x1f5   :  { %p428_p3 = pnand %p426_p2, %p423_p1 }
 0x1f7   :  { %431 = shalt.err (!%p428_p3)
}
 0x1f8   :  { %266 = dma.vmem_to_hbm [thread:$0]  %s264_s8, 128, %s541_s5, [#allocation5]  }
 0x1f9   :  { %436 = dma.done.wait [#allocation5], 128  }
 0x1fa   :  { %437 = vsyncadd [#allocation5], 4294967168 }
 0x1fb   :  { %270 = vsyncpa [#allocation4], 1 }
 0x1fc   :  { %271 = vsyncpa [#allocation7], 1 }
 0x1fd   :  { %272 = vsyncpa [#allocation5], 1 }

</bundles_post_ra>
